<compile_context>
chip_gen: v6e
topology: v6e:2x2x1
jax: 0.10.0
libtpu: 0.0.40
codegen_flags: <defaults>
</compile_context>

<pallas_src>
import functools

import jax
import jax.numpy as jnp
from jax import lax
from jax.experimental import pallas as pl
from jax.experimental.pallas import tpu as pltpu


def _round_up(x: int, m: int) -> int:
    return (x + m - 1) // m * m


def _dense_kernel(x_ref, w_ref, b_ref, o_ref):
    # x_ref: [block_rows, H]   (H = padded hidden_size, lane axis)
    # w_ref: [C, H]            (PyTorch nn.Linear layout: [out_features, in_features])
    # b_ref: [1, C]
    # o_ref: [block_rows, C]
    acc = lax.dot_general(
        x_ref[...], w_ref[...],
        dimension_numbers=(((1,), (1,)), ((), ())),   # contract H with H == x @ W.T
        preferred_element_type=jnp.float32)
    o_ref[...] = (acc + b_ref[...].astype(jnp.float32)).astype(o_ref.dtype)


@functools.partial(jax.jit, static_argnames=("block_rows",))
def _pooler_start_logits_2d(x2d, weight, bias, block_rows=512):
    n, h = x2d.shape
    c = weight.shape[0]

    # Lane-dense padding (multiples of 128 on the last dims) and a
    # sublane-aligned row tile.  Padded hidden columns are zero -> contribute
    # nothing to the dot; padded class columns / extra rows are sliced off.
    h_pad = _round_up(h, 128)
    c_pad = _round_up(c, 128)
    block_rows = max(8, _round_up(min(block_rows, _round_up(n, 8)), 8))
    n_pad = _round_up(n, block_rows)

    dtype = x2d.dtype
    x_p = jnp.pad(x2d, ((0, n_pad - n), (0, h_pad - h)))
    w_p = jnp.pad(weight.astype(dtype), ((0, c_pad - c), (0, h_pad - h)))
    b_p = jnp.pad(bias.astype(dtype), (0, c_pad - c)).reshape(1, c_pad)

    grid = (n_pad // block_rows,)
    bytes_per_el = x2d.dtype.itemsize
    cost = pl.CostEstimate(
        flops=2 * n_pad * h_pad * c_pad,
        transcendentals=0,
        bytes_accessed=(n_pad * h_pad + c_pad * h_pad + c_pad
                        + n_pad * c_pad) * bytes_per_el)

    out_p = pl.pallas_call(
        _dense_kernel,
        out_shape=jax.ShapeDtypeStruct((n_pad, c_pad), dtype),
        grid_spec=pltpu.PrefetchScalarGridSpec(
            num_scalar_prefetch=0,
            grid=grid,
            in_specs=[
                pl.BlockSpec((block_rows, h_pad), lambda i: (i, 0)),
                pl.BlockSpec((c_pad, h_pad), lambda i: (0, 0)),   # weight stays resident
                pl.BlockSpec((1, c_pad), lambda i: (0, 0)),       # bias stays resident
            ],
            out_specs=pl.BlockSpec((block_rows, c_pad), lambda i: (i, 0)),
        ),
        compiler_params=pltpu.CompilerParams(
            dimension_semantics=("parallel",)),
        cost_estimate=cost,
    )(x_p, w_p, b_p)

    return out_p[:n, :c]


def pooler_start_logits(hidden_states, weight, bias, p_mask=None, block_rows=512):
    """hidden_states: [..., hidden_size]; weight: [num_classes, hidden_size]; bias: [num_classes]."""
    # p_mask is accepted for API parity with the PyTorch module; the original
    # forward never uses it, so it is ignored here as well.
    del p_mask
    lead = hidden_states.shape[:-1]
    x2d = hidden_states.reshape(-1, hidden_states.shape[-1])
    out2d = _pooler_start_logits_2d(x2d, weight, bias, block_rows=block_rows)
    return out2d.reshape(*lead, weight.shape[0])


if __name__ == "__main__":
    # Small, module-consistent shapes: batch=2, seq=8, hidden=64, classes=10.
    batch, seq = 2, 8
    hidden_size, num_classes = 64, 10

    key = jax.random.PRNGKey(0)
    kx, kw, kb = jax.random.split(key, 3)

    hidden_states = jax.random.normal(kx, (batch, seq, hidden_size), dtype=jnp.float32)
    # nn.Linear parameter shapes: weight [out, in], bias [out]
    weight = jax.random.normal(kw, (num_classes, hidden_size), dtype=jnp.float32) * 0.1
    bias = jax.random.normal(kb, (num_classes,), dtype=jnp.float32) * 0.1

    out = pooler_start_logits(hidden_states, weight, bias, p_mask=None)
    jax.block_until_ready(out)

    # Pure-JAX reference of the forward semantics.
    ref = hidden_states @ weight.T + bias
    assert out.shape == (batch, seq, num_classes)
    assert jnp.allclose(out, ref, atol=1e-5, rtol=1e-5), "mismatch vs reference"

    print("KERNEL_OK")
</pallas_src>

<mosaic_0001>
module attributes {stable_mosaic.version = 11 : i64} {
  func.func @_dense_kernel(%arg0: i32, %arg1: memref<16x128xf32, #tpu.memory_space<vmem>>, %arg2: memref<128x128xf32, #tpu.memory_space<vmem>>, %arg3: memref<1x128xf32, #tpu.memory_space<vmem>>, %arg4: memref<16x128xf32, #tpu.memory_space<vmem>>) attributes {dimension_semantics = [#tpu.dimension_semantics<parallel>], iteration_bounds = array<i64: 1>, scalar_prefetch = 0 : i64, scratch_operands = 0 : i64, tpu.core_type = #tpu.core_type<tc>, window_params = [{transform_indices = @transform_0, window_bounds = array<i64: 16, 128>}, {pipeline_mode = #tpu.pipeline_mode<synchronous>, transform_indices = @transform_1, window_bounds = array<i64: 128, 128>}, {pipeline_mode = #tpu.pipeline_mode<synchronous>, transform_indices = @transform_2, window_bounds = array<i64: 1, 128>}, {transform_indices = @transform_3, window_bounds = array<i64: 16, 128>}]} {
    %c0 = arith.constant 0 : index
    %c0_0 = arith.constant 0 : index
    %0 = vector.load %arg1[%c0, %c0_0] : memref<16x128xf32, #tpu.memory_space<vmem>>, vector<16x128xf32>
    %c0_1 = arith.constant 0 : index
    %c0_2 = arith.constant 0 : index
    %1 = vector.load %arg2[%c0_1, %c0_2] : memref<128x128xf32, #tpu.memory_space<vmem>>, vector<128x128xf32>
    %cst = arith.constant dense<0.000000e+00> : vector<16x128xf32>
    %2 = tpu.matmul %0, %1, %cst {dimension_numbers = #tpu.dot_dimension_numbers<[1], [1], [0], [0], [0, 0, 1, 0], [], []>} : vector<16x128xf32>, vector<128x128xf32>, vector<16x128xf32> -> vector<16x128xf32>
    %c0_3 = arith.constant 0 : index
    %c0_4 = arith.constant 0 : index
    %3 = vector.load %arg3[%c0_3, %c0_4] : memref<1x128xf32, #tpu.memory_space<vmem>>, vector<1x128xf32>
    %4 = vector.broadcast %3 : vector<1x128xf32> to vector<16x128xf32>
    %5 = arith.addf %2, %4 : vector<16x128xf32>
    %c0_5 = arith.constant 0 : index
    %c0_6 = arith.constant 0 : index
    %6 = vector.load %arg4[%c0_5, %c0_6] : memref<16x128xf32, #tpu.memory_space<vmem>>, vector<16x128xf32>
    tpu.vector_store %arg4[%c0_5, %c0_6], %5 {strides = array<i32>} : memref<16x128xf32, #tpu.memory_space<vmem>>, vector<16x128xf32>,
    return
  }
  func.func @transform_0(%arg0: i32) -> (i32, i32) {
    %c0_i32 = arith.constant 0 : i32
    %c0_i32_0 = arith.constant 0 : i32
    return %arg0, %c0_i32 : i32, i32
  }
  func.func @transform_1(%arg0: i32) -> (i32, i32) {
    %c0_i32 = arith.constant 0 : i32
    %c0_i32_0 = arith.constant 0 : i32
    %c0_i32_1 = arith.constant 0 : i32
    return %c0_i32, %c0_i32_0 : i32, i32
  }
  func.func @transform_2(%arg0: i32) -> (i32, i32) {
    %c0_i32 = arith.constant 0 : i32
    %c0_i32_0 = arith.constant 0 : i32
    %c0_i32_1 = arith.constant 0 : i32
    return %c0_i32, %c0_i32_0 : i32, i32
  }
  func.func @transform_3(%arg0: i32) -> (i32, i32) {
    %c0_i32 = arith.constant 0 : i32
    %c0_i32_0 = arith.constant 0 : i32
    return %arg0, %c0_i32 : i32, i32
  }
}

</mosaic_0001>

<bundles_post_ra>
// kernel: _pooler_start_logits_2d.1
= control target key start
LH: loop header
LB: loop body
LE: loop exit
PB: predicated region body
PF: predicated region fallthrough
CT: control target
= control target key end

     0   :  { %s295_s0 = inlined_call_operand.vmem [shape: f32[16,128], index: 0, kind: input, shape index: {}]   ;;  %s296_s1 = inlined_call_operand.vmem [shape: f32[128,128], index: 1, kind: input, shape index: {}]   ;;  %s297_s2 = inlined_call_operand.vmem [shape: f32[1,128], index: 2, kind: input, shape index: {}]   ;;  %s298_s3 = inlined_call_operand.hbm [shape: f32[16,128], index: 3, kind: output, shape index: {}]  }
   0x1   :  { %v32_v0 = vld [vmem:[%s296_s1 + $0x78] sm:$0xff]  ;;  %v31_v1 = vld [vmem:[%s296_s1 + $0x70] sm:$0xff]  ;;  %v30_v2 = vld [vmem:[%s296_s1 + $0x68] sm:$0xff] }
   0x2   :  { %152 = vmatprep.subr.mxu0 %v32_v0  ;;  %v15_v3 = vld [vmem:[%s295_s0] sm:$0xff] }
   0x3   :  { %153 = vmatpush3.xpose.msra.mxu0 %v32_v0  ;;  %184 = vmatprep.mubr.f32.mxu0 %v15_v3 }
   0x4   :  { %154 = vmatprep.subr.mxu0 %v31_v1 }
   0x7   :  { %155 = vmatpush3.xpose.msra.mxu0 %v31_v1 }
   0x8   :  { %8 = vsyncpa [#allocation3], 0  ;;  %156 = vmatprep.subr.mxu0 %v30_v2  ;;  %v29_v4 = vld [vmem:[%s296_s1 + $0x60] sm:$0xff]  ;;  %v28_v5 = vld [vmem:[%s296_s1 + $0x58] sm:$0xff]  ;;  %s212_s23 = smov [#allocation2]  }
   0x9   :  { %v27_v6 = vld [vmem:[%s296_s1 + $0x50] sm:$0xff]  ;;  %v26_v7 = vld [vmem:[%s296_s1 + $0x48] sm:$0xff]  ;;  %v25_v8 = vld [vmem:[%s296_s1 + $0x40] sm:$0xff]  ;;  %s122_s24 = sshll.u32 %s212_s23, 4  ;;  %s123_s24 = int_to_ptr.vmem [resolvable:$true] %s122_s24 }
   0xa   :  { %v24_v9 = vld [vmem:[%s296_s1 + $0x38] sm:$0xff]  ;;  %v23_v10 = vld [vmem:[%s296_s1 + $0x30] sm:$0xff]  ;;  %v22_v11 = vld [vmem:[%s296_s1 + $0x28] sm:$0xff]  ;;  %p195_p1 = scmp.lt.s32.totalorder %s123_s24, %s123_s24 }
   0xb   :  { %157 = vmatpush3.xpose.msra.mxu0 %v30_v2  ;;  %v21_v12 = vld [vmem:[%s296_s1 + $0x20] sm:$0xff]  ;;  %v20_v13 = vld [vmem:[%s296_s1 + $0x18] sm:$0xff]  ;;  %v19_v14 = vld [vmem:[%s296_s1 + $0x10] sm:$0xff] }
   0xc   :  { %158 = vmatprep.subr.mxu0 %v29_v4  ;;  %v18_v15 = vld [vmem:[%s296_s1 + $0x8] sm:$0xff]  ;;  %v17_v16 = vld [vmem:[%s296_s1] sm:$0xff]  ;;  %s190_s1 = scalar_lea.vmem %s123_s24, 256 }
   0xd   :  { %v16_v17 = vld [vmem:[%s295_s0 + $0x8] sm:$0xff]  ;;  %v133_v18 = vld [vmem:[%s297_s2] ss:$0 sm:$0xff]  ;;  %p191_p0 = scmp.ne.s32.totalorder %s123_s24, %s190_s1  ;;  %p196_p2 = scmp.lt.s32.totalorder %s190_s1, %s190_s1 }
   0xf   :  { %159 = vmatpush3.xpose.msra.mxu0 %v29_v4  ;;  %p197_p3 = por %p196_p2, %p195_p1 }
  0x10   :  { %160 = vmatprep.subr.mxu0 %v28_v5 }
  0x11   :  { %p198_p4 = pnand %p197_p3, %p191_p0 }
  0x13   :  { %161 = vmatpush3.xpose.msra.mxu0 %v28_v5 }
  0x14   :  { %162 = vmatprep.subr.mxu0 %v27_v6 }
  0x17   :  { %163 = vmatpush3.xpose.msra.mxu0 %v27_v6 }
  0x18   :  { %164 = vmatprep.subr.mxu0 %v26_v7 }
  0x1b   :  { %165 = vmatpush3.xpose.msra.mxu0 %v26_v7 }
  0x1c   :  { %166 = vmatprep.subr.mxu0 %v25_v8 }
  0x1f   :  { %167 = vmatpush3.xpose.msra.mxu0 %v25_v8 }
  0x20   :  { %168 = vmatprep.subr.mxu0 %v24_v9 }
  0x23   :  { %169 = vmatpush3.xpose.msra.mxu0 %v24_v9 }
  0x24   :  { %170 = vmatprep.subr.mxu0 %v23_v10 }
  0x27   :  { %171 = vmatpush3.xpose.msra.mxu0 %v23_v10 }
  0x28   :  { %172 = vmatprep.subr.mxu0 %v22_v11 }
  0x2b   :  { %173 = vmatpush3.xpose.msra.mxu0 %v22_v11 }
  0x2c   :  { %174 = vmatprep.subr.mxu0 %v21_v12 }
  0x2f   :  { %175 = vmatpush3.xpose.msra.mxu0 %v21_v12 }
  0x30   :  { %176 = vmatprep.subr.mxu0 %v20_v13 }
  0x33   :  { %177 = vmatpush3.xpose.msra.mxu0 %v20_v13 }
  0x34   :  { %178 = vmatprep.subr.mxu0 %v19_v14 }
  0x37   :  { %179 = vmatpush3.xpose.msra.mxu0 %v19_v14 }
  0x38   :  { %180 = vmatprep.subr.mxu0 %v18_v15 }
  0x3b   :  { %181 = vmatpush3.xpose.msra.mxu0 %v18_v15 }
  0x3c   :  { %182 = vmatprep.subr.mxu0 %v17_v16 }
  0x3f   :  { %183 = vmatpush3.xpose.msra.mxu0 %v17_v16 }
  0x42   :  { %185 = vmatmul.mubr.f32.vlgmr.msra.gmra.mxu0 %v16_v17 }
 0x102   :  { %v186_v19 = vpop.f32.mrf.mxu0 }
 0x103   :  { %v112_v20 = vadd.f32 %v186_v19, %v133_v18 }
 0x104   :  { %v106_v21 = vpop.f32.mrf.mxu0 }
 0x105   :  { %116 = vst [vmem:[#allocation2 + $0x8] sm:$0xff] %v112_v20  ;;  %v107_v22 = vadd.f32 %v133_v18, %v106_v21 }
 0x107   :  { %115 = vst [vmem:[#allocation2] sm:$0xff] %v107_v22 }
 0x108   :  { %201 = shalt.err (!%p198_p4)
}
 0x109   :  { %s213_s0 = smov 128   ;;  %s214_s25 = smov 8  }
 0x10a   :  { %128 = dma.vmem_to_hbm [thread:$0]  %s123_s24, 256, %s298_s3, [#allocation3], %s213_s0, %s213_s0, %s214_s25  }
 0x10b   :  { %210 = dma.done.wait [#allocation3], 256  }
 0x10c   :  { %211 = vsyncadd [#allocation3], 4294967040 }
 0x10d   :  { %132 = vsyncpa [#allocation3], 1 }

</bundles_post_ra>
